<compile_context>
chip_gen: v7x
topology: tpu7x:2x2x1
jax: 0.10.0
libtpu: 0.0.40
codegen_flags: <defaults>
</compile_context>

<pallas_src>
import functools

import jax
import jax.numpy as jnp
from jax import lax
from jax.experimental import pallas as pl
from jax.experimental.pallas import tpu as pltpu


def _round_up(x, m):
    return ((x + m - 1) // m) * m


def _pad_feature_dim(d):
    # Lane-dense padding only pays off once the dim is already >= 128; below that the
    # block last dim can simply equal the full array dim (legal) and padding would
    # multiply x/out HBM traffic by up to 8x.
    if d >= 128 and d % 128 != 0:
        return _round_up(d, 128)
    return d


def _vmem_limit_bytes():
    cap = None
    try:
        cap = getattr(pltpu.get_tpu_info(), "vmem_capacity_bytes", None)
    except Exception:
        cap = None
    if not cap:
        return 48 * 1024 * 1024  # safe on every generation (v7x has 64 MiB / core)
    return int(max(32 * 1024 * 1024, min(100 * 1024 * 1024, (cap * 3) // 4)))


def _translation_block_kernel(x_ref, w1_ref, b1_ref, w2_ref, b2_ref, w3_ref, b3_ref,
                              o_ref, *, row_block):
    mm_dtype = w1_ref.dtype

    def mlp(x_rows):
        # fc1 + ReLU: MXU matmul (operands in mm_dtype), f32 accumulation, f32 epilogue.
        h = jnp.dot(x_rows.astype(mm_dtype), w1_ref[...],
                    preferred_element_type=jnp.float32) + b1_ref[...]
        h = jnp.maximum(h, 0.0)
        # fc2 + ReLU
        h = jnp.dot(h.astype(mm_dtype), w2_ref[...],
                    preferred_element_type=jnp.float32) + b2_ref[...]
        h = jnp.maximum(h, 0.0)
        # fc3 (no activation)
        out = jnp.dot(h.astype(mm_dtype), w3_ref[...],
                      preferred_element_type=jnp.float32) + b3_ref[...]
        return out.astype(o_ref.dtype)

    bt = x_ref.shape[0]
    if row_block is None or row_block >= bt:
        o_ref[...] = mlp(x_ref[...])
    else:
        n_sub = bt // row_block

        def body(j, carry):
            r0 = pl.multiple_of(j * row_block, row_block)
            o_ref[pl.ds(r0, row_block), :] = mlp(x_ref[pl.ds(r0, row_block), :])
            return carry

        lax.fori_loop(0, n_sub, body, 0, unroll=True)


def prepare_translation_block_params(w1, b1, w2, b2, w3, b3, *,
                                     matmul_dtype=jnp.bfloat16):
    """One-time (init-time) weight prep: cast matmul operands + lane-pad if needed.

    w1: (D_in, D_h); w2: (D_h, D_h); w3: (D_h, D_in); biases 1-D.
    """
    D_in, D_h = w1.shape
    assert w2.shape == (D_h, D_h) and w3.shape == (D_h, D_in)
    assert b1.shape == (D_h,) and b2.shape == (D_h,) and b3.shape == (D_in,)

    D_in_p = _pad_feature_dim(D_in)
    D_h_p = _pad_feature_dim(D_h)

    def pad2(a, rows, cols):
        if a.shape == (rows, cols):
            return a
        return jnp.pad(a, ((0, rows - a.shape[0]), (0, cols - a.shape[1])))

    def pad_bias(b, cols):
        b = b.astype(jnp.float32)  # bias add stays f32 on the VPU
        if b.shape[0] != cols:
            b = jnp.pad(b, (0, cols - b.shape[0]))
        return b.reshape(1, cols)

    return {
        "input_dim": D_in,
        "w1": pad2(w1.astype(matmul_dtype), D_in_p, D_h_p),
        "b1": pad_bias(b1, D_h_p),
        "w2": pad2(w2.astype(matmul_dtype), D_h_p, D_h_p),
        "b2": pad_bias(b2, D_h_p),
        "w3": pad2(w3.astype(matmul_dtype), D_h_p, D_in_p),
        "b3": pad_bias(b3, D_in_p),
    }


def translation_block_apply(x, params, *, batch_tile=512, min_grid_steps=2):
    """x: (B, D_in) -> (B, D_in).  params from prepare_translation_block_params()."""
    w1, b1 = params["w1"], params["b1"]
    w2, b2 = params["w2"], params["b2"]
    w3, b3 = params["w3"], params["b3"]
    D_in = params["input_dim"]
    D_in_p, D_h_p = w1.shape

    B = x.shape[0]
    assert x.shape[1] == D_in
    out_dtype = x.dtype

    # Sublane packing of the activation tiles (x / out keep their own dtype; the cast
    # to the matmul dtype happens inside the kernel, avoiding an extra HBM pass).
    sub = max(8, 32 // jnp.dtype(out_dtype).itemsize)

    # Balanced batch tiling; prefer >= min_grid_steps steps so the "parallel" axis can
    # shard across both TensorCores on v7x (per-step overhead is only ~0.35 us).
    n_steps = max(1, -(-B // batch_tile))
    if B >= min_grid_steps * sub:
        n_steps = max(n_steps, min_grid_steps)
    bt = _round_up(-(-B // n_steps), sub)
    B_p = _round_up(B, bt)
    grid = (B_p // bt,)

    # In-kernel row sub-tiling (only when it divides evenly) so MXU / VPU work of
    # adjacent sub-blocks can overlap.
    row_block = None
    for rb in (256, 128):
        if bt > rb and bt % rb == 0:
            row_block = rb
            break

    # Fast path: no padding work at all when shapes already line up.
    x_in = x
    if B_p != B or D_in_p != D_in:
        x_in = jnp.pad(x, ((0, B_p - B), (0, D_in_p - D_in)))

    kernel = functools.partial(_translation_block_kernel, row_block=row_block)

    flops = 2 * B_p * (2 * D_in_p * D_h_p + D_h_p * D_h_p)
    bytes_accessed = int(
        x_in.size * x_in.dtype.itemsize
        + B_p * D_in_p * jnp.dtype(out_dtype).itemsize
        + sum(a.size * a.dtype.itemsize for a in (w1, b1, w2, b2, w3, b3))
    )
    cost = pl.CostEstimate(flops=flops, transcendentals=0,
                           bytes_accessed=bytes_accessed)

    def run(single_buffer_weights):
        def const_spec(shape):
            idx = lambda i: (0,) * len(shape)
            if single_buffer_weights:
                # Constant block index -> double-buffering these is pure VMEM waste.
                return pl.BlockSpec(shape, idx, pipeline_mode=pl.Buffered(1))
            return pl.BlockSpec(shape, idx)

        return pl.pallas_call(
            kernel,
            out_shape=jax.ShapeDtypeStruct((B_p, D_in_p), out_dtype),
            grid_spec=pl.GridSpec(
                grid=grid,
                in_specs=[
                    pl.BlockSpec((bt, D_in_p), lambda i: (i, 0)),   # x tile
                    const_spec((D_in_p, D_h_p)),                    # w1
                    const_spec((1, D_h_p)),                         # b1
                    const_spec((D_h_p, D_h_p)),                     # w2
                    const_spec((1, D_h_p)),                         # b2
                    const_spec((D_h_p, D_in_p)),                    # w3
                    const_spec((1, D_in_p)),                        # b3
                ],
                out_specs=pl.BlockSpec((bt, D_in_p), lambda i: (i, 0)),
            ),
            compiler_params=pltpu.CompilerParams(
                dimension_semantics=("parallel",),
                vmem_limit_bytes=_vmem_limit_bytes(),
            ),
            cost_estimate=cost,
        )(x_in, w1, b1, w2, b2, w3, b3)

    # TODO(synk): add a K/N-tiled reduction fallback (VMEM accumulator + "arbitrary"
    # axis) for hidden dims large enough that the resident weights exceed the per-core
    # VMEM budget (D_h of a few thousand on v7x).
    try:
        out_p = run(single_buffer_weights=True)
    except Exception:
        # Older Pallas versions may not accept pipeline_mode=pl.Buffered(1).
        out_p = run(single_buffer_weights=False)

    if B_p == B and D_in_p == D_in:
        return out_p
    return out_p[:B, :D_in]


def translation_block(x, w1, b1, w2, b2, w3, b3, *, matmul_dtype=jnp.bfloat16,
                      batch_tile=512):
    """One-shot convenience wrapper (prep + apply). For repeated calls, prepare once."""
    params = prepare_translation_block_params(w1, b1, w2, b2, w3, b3,
                                              matmul_dtype=matmul_dtype)
    return translation_block_apply(x, params, batch_tile=batch_tile)


def reference(x, w1, b1, w2, b2, w3, b3):
    h = jnp.maximum(x @ w1 + b1, 0.0)
    h = jnp.maximum(h @ w2 + b2, 0.0)
    return h @ w3 + b3


if __name__ == "__main__":
    input_dim = 16
    hidden_dim = 32
    batch = 16

    key = jax.random.PRNGKey(0)
    kx, k1, k2, k3, kb1, kb2, kb3, kx2, kx3 = jax.random.split(key, 9)

    # Deterministic init (uniform, roughly PyTorch Linear's default scale).
    def uinit(k, shape, fan_in):
        bound = 1.0 / jnp.sqrt(fan_in)
        return jax.random.uniform(k, shape, jnp.float32, -bound, bound)

    x = jax.random.normal(kx, (batch, input_dim), dtype=jnp.float32)
    w1 = uinit(k1, (input_dim, hidden_dim), input_dim)
    b1 = uinit(kb1, (hidden_dim,), input_dim)
    w2 = uinit(k2, (hidden_dim, hidden_dim), hidden_dim)
    b2 = uinit(kb2, (hidden_dim,), hidden_dim)
    w3 = uinit(k3, (hidden_dim, input_dim), hidden_dim)
    b3 = uinit(kb3, (input_dim,), hidden_dim)

    ref = reference(x, w1, b1, w2, b2, w3, b3)

    # Exact f32 matmul path (tight tolerance).
    params_f32 = prepare_translation_block_params(w1, b1, w2, b2, w3, b3,
                                                  matmul_dtype=jnp.float32)
    out_f32 = jax.block_until_ready(translation_block_apply(x, params_f32))
    assert out_f32.shape == (batch, input_dim)
    assert jnp.allclose(out_f32, ref, atol=1e-5, rtol=1e-5), "f32 mismatch vs reference"

    # Default bf16-MXU path (weights prepared once, reused across calls).
    params = prepare_translation_block_params(w1, b1, w2, b2, w3, b3)
    out_bf16 = jax.block_until_ready(translation_block_apply(x, params))
    assert jnp.allclose(out_bf16, ref, atol=5e-2, rtol=5e-2), "bf16 mismatch vs reference"

    # Non-divisible batch exercising padding + a multi-step ("parallel") grid.
    x2 = jax.random.normal(kx2, (40, input_dim), dtype=jnp.float32)
    out2 = jax.block_until_ready(translation_block_apply(x2, params_f32, batch_tile=16))
    ref2 = reference(x2, w1, b1, w2, b2, w3, b3)
    assert out2.shape == (40, input_dim)
    assert jnp.allclose(out2, ref2, atol=1e-5, rtol=1e-5), "remainder-path mismatch"

    # Larger batch exercising the 2-step grid + in-kernel row sub-tiling path.
    x3 = jax.random.normal(kx3, (1024, input_dim), dtype=jnp.float32)
    out3 = jax.block_until_ready(translation_block_apply(x3, params))
    ref3 = reference(x3, w1, b1, w2, b2, w3, b3)
    assert jnp.allclose(out3, ref3, atol=5e-2, rtol=5e-2), "sub-tiled path mismatch"

    # One-shot convenience wrapper (bf16 default).
    out4 = jax.block_until_ready(translation_block(x, w1, b1, w2, b2, w3, b3))
    assert jnp.allclose(out4, ref, atol=5e-2, rtol=5e-2), "wrapper mismatch vs reference"

    print("KERNEL_OK")
</pallas_src>

<mosaic_0001>
module attributes {stable_mosaic.version = 11 : i64} {
  func.func @_translation_block_kernel(%arg0: i32, %arg1: memref<8x16xf32, #tpu.memory_space<vmem>>, %arg2: memref<16x32xf32, #tpu.memory_space<vmem>>, %arg3: memref<1x32xf32, #tpu.memory_space<vmem>>, %arg4: memref<32x32xf32, #tpu.memory_space<vmem>>, %arg5: memref<1x32xf32, #tpu.memory_space<vmem>>, %arg6: memref<32x16xf32, #tpu.memory_space<vmem>>, %arg7: memref<1x16xf32, #tpu.memory_space<vmem>>, %arg8: memref<8x16xf32, #tpu.memory_space<vmem>>) attributes {dimension_semantics = [#tpu.dimension_semantics<parallel>], iteration_bounds = array<i64: 2>, scalar_prefetch = 0 : i64, scratch_operands = 0 : i64, tpu.core_type = #tpu.core_type<tc>, window_params = [{transform_indices = @transform_0, window_bounds = array<i64: 8, 16>}, {pipeline_mode = #tpu.pipeline_mode<synchronous>, transform_indices = @transform_1, window_bounds = array<i64: 16, 32>}, {pipeline_mode = #tpu.pipeline_mode<synchronous>, transform_indices = @transform_2, window_bounds = array<i64: 1, 32>}, {pipeline_mode = #tpu.pipeline_mode<synchronous>, transform_indices = @transform_3, window_bounds = array<i64: 32, 32>}, {pipeline_mode = #tpu.pipeline_mode<synchronous>, transform_indices = @transform_4, window_bounds = array<i64: 1, 32>}, {pipeline_mode = #tpu.pipeline_mode<synchronous>, transform_indices = @transform_5, window_bounds = array<i64: 32, 16>}, {pipeline_mode = #tpu.pipeline_mode<synchronous>, transform_indices = @transform_6, window_bounds = array<i64: 1, 16>}, {transform_indices = @transform_7, window_bounds = array<i64: 8, 16>}]} {
    %c0 = arith.constant 0 : index
    %c0_0 = arith.constant 0 : index
    %0 = vector.load %arg1[%c0, %c0_0] : memref<8x16xf32, #tpu.memory_space<vmem>>, vector<8x16xf32>
    %c0_1 = arith.constant 0 : index
    %c0_2 = arith.constant 0 : index
    %1 = vector.load %arg2[%c0_1, %c0_2] : memref<16x32xf32, #tpu.memory_space<vmem>>, vector<16x32xf32>
    %cst = arith.constant dense<0.000000e+00> : vector<8x32xf32>
    %2 = tpu.matmul %0, %1, %cst {dimension_numbers = #tpu.dot_dimension_numbers<[1], [0], [0], [1], [0, 0, 1, 1], [], []>} : vector<8x16xf32>, vector<16x32xf32>, vector<8x32xf32> -> vector<8x32xf32>
    %c0_3 = arith.constant 0 : index
    %c0_4 = arith.constant 0 : index
    %3 = vector.load %arg3[%c0_3, %c0_4] : memref<1x32xf32, #tpu.memory_space<vmem>>, vector<1x32xf32>
    %4 = vector.broadcast %3 : vector<1x32xf32> to vector<8x32xf32>
    %5 = arith.addf %2, %4 : vector<8x32xf32>
    %cst_5 = arith.constant 0.000000e+00 : f32
    %6 = vector.broadcast %cst_5 : f32 to vector<8x32xf32>
    %7 = arith.maximumf %5, %6 : vector<8x32xf32>
    %c0_6 = arith.constant 0 : index
    %c0_7 = arith.constant 0 : index
    %8 = vector.load %arg4[%c0_6, %c0_7] : memref<32x32xf32, #tpu.memory_space<vmem>>, vector<32x32xf32>
    %cst_8 = arith.constant dense<0.000000e+00> : vector<8x32xf32>
    %9 = tpu.matmul %7, %8, %cst_8 {dimension_numbers = #tpu.dot_dimension_numbers<[1], [0], [0], [1], [0, 0, 1, 1], [], []>} : vector<8x32xf32>, vector<32x32xf32>, vector<8x32xf32> -> vector<8x32xf32>
    %c0_9 = arith.constant 0 : index
    %c0_10 = arith.constant 0 : index
    %10 = vector.load %arg5[%c0_9, %c0_10] : memref<1x32xf32, #tpu.memory_space<vmem>>, vector<1x32xf32>
    %11 = vector.broadcast %10 : vector<1x32xf32> to vector<8x32xf32>
    %12 = arith.addf %9, %11 : vector<8x32xf32>
    %cst_11 = arith.constant 0.000000e+00 : f32
    %13 = vector.broadcast %cst_11 : f32 to vector<8x32xf32>
    %14 = arith.maximumf %12, %13 : vector<8x32xf32>
    %c0_12 = arith.constant 0 : index
    %c0_13 = arith.constant 0 : index
    %15 = vector.load %arg6[%c0_12, %c0_13] : memref<32x16xf32, #tpu.memory_space<vmem>>, vector<32x16xf32>
    %cst_14 = arith.constant dense<0.000000e+00> : vector<8x16xf32>
    %16 = tpu.matmul %14, %15, %cst_14 {dimension_numbers = #tpu.dot_dimension_numbers<[1], [0], [0], [1], [0, 0, 1, 1], [], []>} : vector<8x32xf32>, vector<32x16xf32>, vector<8x16xf32> -> vector<8x16xf32>
    %c0_15 = arith.constant 0 : index
    %c0_16 = arith.constant 0 : index
    %17 = vector.load %arg7[%c0_15, %c0_16] : memref<1x16xf32, #tpu.memory_space<vmem>>, vector<1x16xf32>
    %18 = vector.broadcast %17 : vector<1x16xf32> to vector<8x16xf32>
    %19 = arith.addf %16, %18 : vector<8x16xf32>
    %c0_17 = arith.constant 0 : index
    %c0_18 = arith.constant 0 : index
    %20 = vector.load %arg8[%c0_17, %c0_18] : memref<8x16xf32, #tpu.memory_space<vmem>>, vector<8x16xf32>
    tpu.vector_store %arg8[%c0_17, %c0_18], %19 {strides = array<i32>} : memref<8x16xf32, #tpu.memory_space<vmem>>, vector<8x16xf32>,
    return
  }
  func.func @transform_0(%arg0: i32) -> (i32, i32) {
    %c0_i32 = arith.constant 0 : i32
    %c0_i32_0 = arith.constant 0 : i32
    return %arg0, %c0_i32 : i32, i32
  }
  func.func @transform_1(%arg0: i32) -> (i32, i32) {
    %c0_i32 = arith.constant 0 : i32
    %c0_i32_0 = arith.constant 0 : i32
    %c0_i32_1 = arith.constant 0 : i32
    return %c0_i32, %c0_i32_0 : i32, i32
  }
  func.func @transform_2(%arg0: i32) -> (i32, i32) {
    %c0_i32 = arith.constant 0 : i32
    %c0_i32_0 = arith.constant 0 : i32
    %c0_i32_1 = arith.constant 0 : i32
    return %c0_i32, %c0_i32_0 : i32, i32
  }
  func.func @transform_3(%arg0: i32) -> (i32, i32) {
    %c0_i32 = arith.constant 0 : i32
    %c0_i32_0 = arith.constant 0 : i32
    %c0_i32_1 = arith.constant 0 : i32
    return %c0_i32, %c0_i32_0 : i32, i32
  }
  func.func @transform_4(%arg0: i32) -> (i32, i32) {
    %c0_i32 = arith.constant 0 : i32
    %c0_i32_0 = arith.constant 0 : i32
    %c0_i32_1 = arith.constant 0 : i32
    return %c0_i32, %c0_i32_0 : i32, i32
  }
  func.func @transform_5(%arg0: i32) -> (i32, i32) {
    %c0_i32 = arith.constant 0 : i32
    %c0_i32_0 = arith.constant 0 : i32
    %c0_i32_1 = arith.constant 0 : i32
    return %c0_i32, %c0_i32_0 : i32, i32
  }
  func.func @transform_6(%arg0: i32) -> (i32, i32) {
    %c0_i32 = arith.constant 0 : i32
    %c0_i32_0 = arith.constant 0 : i32
    %c0_i32_1 = arith.constant 0 : i32
    return %c0_i32, %c0_i32_0 : i32, i32
  }
  func.func @transform_7(%arg0: i32) -> (i32, i32) {
    %c0_i32 = arith.constant 0 : i32
    %c0_i32_0 = arith.constant 0 : i32
    return %arg0, %c0_i32 : i32, i32
  }
}

module attributes {stable_mosaic.version = 11 : i64} {
  func.func @_translation_block_kernel(%arg0: i32, %arg1: memref<8x16xf32, #tpu.memory_space<vmem>>, %arg2: memref<16x32xf32, #tpu.memory_space<vmem>>, %arg3: memref<1x32xf32, #tpu.memory_space<vmem>>, %arg4: memref<32x32xf32, #tpu.memory_space<vmem>>, %arg5: memref<1x32xf32, #tpu.memory_space<vmem>>, %arg6: memref<32x16xf32, #tpu.memory_space<vmem>>, %arg7: memref<1x16xf32, #tpu.memory_space<vmem>>, %arg8: memref<8x16xf32, #tpu.memory_space<vmem>>) attributes {dimension_semantics = [#tpu.dimension_semantics<parallel>], iteration_bounds = array<i64: 2>, scalar_prefetch = 0 : i64, scratch_operands = 0 : i64, tpu.core_type = #tpu.core_type<tc>, window_params = [{transform_indices = @transform_0, window_bounds = array<i64: 8, 16>}, {pipeline_mode = #tpu.pipeline_mode<synchronous>, transform_indices = @transform_1, window_bounds = array<i64: 16, 32>}, {pipeline_mode = #tpu.pipeline_mode<synchronous>, transform_indices = @transform_2, window_bounds = array<i64: 1, 32>}, {pipeline_mode = #tpu.pipeline_mode<synchronous>, transform_indices = @transform_3, window_bounds = array<i64: 32, 32>}, {pipeline_mode = #tpu.pipeline_mode<synchronous>, transform_indices = @transform_4, window_bounds = array<i64: 1, 32>}, {pipeline_mode = #tpu.pipeline_mode<synchronous>, transform_indices = @transform_5, window_bounds = array<i64: 32, 16>}, {pipeline_mode = #tpu.pipeline_mode<synchronous>, transform_indices = @transform_6, window_bounds = array<i64: 1, 16>}, {transform_indices = @transform_7, window_bounds = array<i64: 8, 16>}]} {
    %c0 = arith.constant 0 : index
    %c0_0 = arith.constant 0 : index
    %0 = vector.load %arg1[%c0, %c0_0] : memref<8x16xf32, #tpu.memory_space<vmem>>, vector<8x16xf32>
    %c0_1 = arith.constant 0 : index
    %c0_2 = arith.constant 0 : index
    %1 = vector.load %arg2[%c0_1, %c0_2] : memref<16x32xf32, #tpu.memory_space<vmem>>, vector<16x32xf32>
    %cst = arith.constant dense<0.000000e+00> : vector<8x32xf32>
    %2 = tpu.matmul %0, %1, %cst {dimension_numbers = #tpu.dot_dimension_numbers<[1], [0], [0], [1], [0, 0, 1, 1], [], []>} : vector<8x16xf32>, vector<16x32xf32>, vector<8x32xf32> -> vector<8x32xf32>
    %c0_3 = arith.constant 0 : index
    %c0_4 = arith.constant 0 : index
    %3 = vector.load %arg3[%c0_3, %c0_4] : memref<1x32xf32, #tpu.memory_space<vmem>>, vector<1x32xf32>
    %4 = vector.broadcast %3 : vector<1x32xf32> to vector<8x32xf32>
    %5 = arith.addf %2, %4 : vector<8x32xf32>
    %cst_5 = arith.constant 0.000000e+00 : f32
    %6 = vector.broadcast %cst_5 : f32 to vector<8x32xf32>
    %7 = arith.maximumf %5, %6 : vector<8x32xf32>
    %c0_6 = arith.constant 0 : index
    %c0_7 = arith.constant 0 : index
    %8 = vector.load %arg4[%c0_6, %c0_7] : memref<32x32xf32, #tpu.memory_space<vmem>>, vector<32x32xf32>
    %cst_8 = arith.constant dense<0.000000e+00> : vector<8x32xf32>
    %9 = tpu.matmul %7, %8, %cst_8 {dimension_numbers = #tpu.dot_dimension_numbers<[1], [0], [0], [1], [0, 0, 1, 1], [], []>} : vector<8x32xf32>, vector<32x32xf32>, vector<8x32xf32> -> vector<8x32xf32>
    %c0_9 = arith.constant 0 : index
    %c0_10 = arith.constant 0 : index
    %10 = vector.load %arg5[%c0_9, %c0_10] : memref<1x32xf32, #tpu.memory_space<vmem>>, vector<1x32xf32>
    %11 = vector.broadcast %10 : vector<1x32xf32> to vector<8x32xf32>
    %12 = arith.addf %9, %11 : vector<8x32xf32>
    %cst_11 = arith.constant 0.000000e+00 : f32
    %13 = vector.broadcast %cst_11 : f32 to vector<8x32xf32>
    %14 = arith.maximumf %12, %13 : vector<8x32xf32>
    %c0_12 = arith.constant 0 : index
    %c0_13 = arith.constant 0 : index
    %15 = vector.load %arg6[%c0_12, %c0_13] : memref<32x16xf32, #tpu.memory_space<vmem>>, vector<32x16xf32>
    %cst_14 = arith.constant dense<0.000000e+00> : vector<8x16xf32>
    %16 = tpu.matmul %14, %15, %cst_14 {dimension_numbers = #tpu.dot_dimension_numbers<[1], [0], [0], [1], [0, 0, 1, 1], [], []>} : vector<8x32xf32>, vector<32x16xf32>, vector<8x16xf32> -> vector<8x16xf32>
    %c0_15 = arith.constant 0 : index
    %c0_16 = arith.constant 0 : index
    %17 = vector.load %arg7[%c0_15, %c0_16] : memref<1x16xf32, #tpu.memory_space<vmem>>, vector<1x16xf32>
    %18 = vector.broadcast %17 : vector<1x16xf32> to vector<8x16xf32>
    %19 = arith.addf %16, %18 : vector<8x16xf32>
    %c0_17 = arith.constant 0 : index
    %c0_18 = arith.constant 0 : index
    %20 = vector.load %arg8[%c0_17, %c0_18] : memref<8x16xf32, #tpu.memory_space<vmem>>, vector<8x16xf32>
    tpu.vector_store %arg8[%c0_17, %c0_18], %19 {strides = array<i32>} : memref<8x16xf32, #tpu.memory_space<vmem>>, vector<8x16xf32>,
    return
  }
  func.func @transform_0(%arg0: i32) -> (i32, i32) {
    %c0_i32 = arith.constant 0 : i32
    %c0_i32_0 = arith.constant 0 : i32
    return %arg0, %c0_i32 : i32, i32
  }
  func.func @transform_1(%arg0: i32) -> (i32, i32) {
    %c0_i32 = arith.constant 0 : i32
    %c0_i32_0 = arith.constant 0 : i32
    %c0_i32_1 = arith.constant 0 : i32
    return %c0_i32, %c0_i32_0 : i32, i32
  }
  func.func @transform_2(%arg0: i32) -> (i32, i32) {
    %c0_i32 = arith.constant 0 : i32
    %c0_i32_0 = arith.constant 0 : i32
    %c0_i32_1 = arith.constant 0 : i32
    return %c0_i32, %c0_i32_0 : i32, i32
  }
  func.func @transform_3(%arg0: i32) -> (i32, i32) {
    %c0_i32 = arith.constant 0 : i32
    %c0_i32_0 = arith.constant 0 : i32
    %c0_i32_1 = arith.constant 0 : i32
    return %c0_i32, %c0_i32_0 : i32, i32
  }
  func.func @transform_4(%arg0: i32) -> (i32, i32) {
    %c0_i32 = arith.constant 0 : i32
    %c0_i32_0 = arith.constant 0 : i32
    %c0_i32_1 = arith.constant 0 : i32
    return %c0_i32, %c0_i32_0 : i32, i32
  }
  func.func @transform_5(%arg0: i32) -> (i32, i32) {
    %c0_i32 = arith.constant 0 : i32
    %c0_i32_0 = arith.constant 0 : i32
    %c0_i32_1 = arith.constant 0 : i32
    return %c0_i32, %c0_i32_0 : i32, i32
  }
  func.func @transform_6(%arg0: i32) -> (i32, i32) {
    %c0_i32 = arith.constant 0 : i32
    %c0_i32_0 = arith.constant 0 : i32
    %c0_i32_1 = arith.constant 0 : i32
    return %c0_i32, %c0_i32_0 : i32, i32
  }
  func.func @transform_7(%arg0: i32) -> (i32, i32) {
    %c0_i32 = arith.constant 0 : i32
    %c0_i32_0 = arith.constant 0 : i32
    return %arg0, %c0_i32 : i32, i32
  }
}

</mosaic_0001>

<bundles_post_ra>
// kernel: tpu_custom_call.1
= control target key start
LH: loop header
LB: loop body
LE: loop exit
PB: predicated region body
PF: predicated region fallthrough
CT: control target
= control target key end

     0   :  { %12 = vsyncpa [#allocation3], 0  ;;  %s1076_s0 = inlined_call_operand.vmem [shape: f32[16,16], index: 0, kind: input, shape index: {}]   ;;  %s1077_s1 = inlined_call_operand.hbm [shape: f32[16,32], index: 1, kind: input, shape index: {}]   ;;  %s1078_s2 = inlined_call_operand.vmem [shape: f32[1,32], index: 2, kind: input, shape index: {}]   ;;  %s1079_s3 = inlined_call_operand.vmem [shape: f32[32,32], index: 3, kind: input, shape index: {}]   ;;  %s1080_s4 = inlined_call_operand.vmem [shape: f32[1,32], index: 4, kind: input, shape index: {}]   ;;  %s1081_s5 = inlined_call_operand.vmem [shape: f32[32,16], index: 5, kind: input, shape index: {}]   ;;  %s1082_s6 = inlined_call_operand.vmem [shape: f32[1,16], index: 6, kind: input, shape index: {}]   ;;  %s1083_s7 = inlined_call_operand.hbm [shape: f32[16,16], index: 7, kind: output, shape index: {}]  }
   0x1   :  { %13 = vsyncpa [#allocation4], 0 }
   0x2   :  { %15 = vsyncpa [#allocation4 + $0x1], 0  ;;  %s903_s24 = smov 0   ;;  %s905_s25 = smov 0  }
   0x3   :  { %s907_s26 = smov 0   ;;  %s909_s27 = smov 0  }
   0x4 LB: > { %s924_s28 = sadd.s32 4294967295, %s854_s27   ;;  %s630_s29 = sadd.s32 4294967294, %s854_s27   ;;  %s854_s27 = sphi %s909_s27, %s1099_s27   ;;  %s850_s26 = sphi %s907_s26, %s1098_s26   ;;  %s846_s25 = sphi %s905_s25, %s1097_s25   ;;  %s842_s24 = sphi %s903_s24, %s1096_s24  }
   0x5   : > { %s928_s30 = sadd.s32 1, %s854_s27   ;;  %s180_s8 = sadd.s32 1, %s850_s26 }
   0x6   : > { %s177_s9 = ssub.s32 %s854_s27, %s928_s30  ;;  %p190_p0 = scmp.ne.s32.totalorder %s850_s26, %s846_s25 }
   0x7   : > { %p178_p1 = scmp.eq.s32.totalorder %s177_s9, 0  ;;  %p191_p2 = scmp.eq.s32.totalorder %s924_s28, 1 }
   0x8   : > { %p196_p3 = scmp.ne.s32.totalorder %s846_s25, %s842_s24  ;;  %p197_p4 = scmp.eq.s32.totalorder %s630_s29, 1 }
   0x9   : > { %s939_s10 = scalar_select %p178_p1, %s850_s26, %s180_s8  }
   0xa   : > { %p941_p5 = por %p191_p2, %p190_p0  ;;  %p945_p6 = por %p197_p4, %p196_p3 }
   0xb   : > { %p631_p7 = scmp.ge.s32.totalorder %s854_s27, 1  ;;  %p204_p8 = scmp.lt.s32.totalorder %s854_s27, 3 }
   0xc   : > { %s1087_s11 = scalar_select %p941_p5, 1, 0 }
   0xd   : > { %s1088_s12 = scalar_select %p945_p6, 1, 0 }
   0xe   : > { %p1084_p9 = scmp.eq.s32.totalorder %s924_s28, 0  ;;  %p952_p10 = pnand %p631_p7, %p204_p8 }
   0xf   : > { %s856_s14 = smov [#allocation2]   ;;  %s760_s19 = scalar_lea.hbm %s1077_s1, 256 }
  0x10   : > { %s1089_s13 = scalar_select %p952_p10, 1, 0 }
  0x11   : > { %s216_s15 = sshll.u32 %s856_s14, 4  ;;  %p711_p11 = pneg %p952_p10  ;;  %s217_s15 = int_to_ptr.vmem [resolvable:$true] %s216_s15 }
  0x12   : > { %p761_p13 = scmp.ne.s32.totalorder %s1077_s1, %s760_s19  ;;  %p767_p3 = scmp.lt.u32.totalorder %s760_s19, %s1077_s1 }
  0x13   : > { %p960_p12 = pnand %p1084_p9, %p711_p11 }
  0x15   : > { %p762_p0 = pneg %p960_p12 }
  0x17   : > { %p763_p1 = pnand %p762_p0, %p761_p13 }
  0x19   : > { %p764_p2 = pneg %p763_p1 }
  0x1b   : > { %p769_p4 = pnand %p767_p3, %p764_p2 }
  0x1d   : > { %772 = shalt.err (!%p769_p4)
}
  0x1e   : > { %s773_s29 = scalar_lea.vmem %s217_s15, 256  ;;  %p781_p9 = scmp.lt.s32.totalorder %s217_s15, %s217_s15 }
  0x1f   : > { %p774_p7 = scmp.ne.s32.totalorder %s217_s15, %s773_s29  ;;  %p782_p6 = scmp.lt.s32.totalorder %s773_s29, %s773_s29 }
  0x21   : > { %p776_p8 = pnand %p774_p7, %p762_p0  ;;  %p783_p5 = por %p782_p6, %p781_p9 }
  0x23   : > { %p777_p11 = pneg %p776_p8 }
  0x25   : > { %p784_p10 = pnand %p783_p5, %p777_p11 }
  0x27   : > { %787 = shalt.err (!%p784_p10)
}
  0x28   : > { %s857_s8 = smov 128   ;;  %s858_s9 = smov 8  }
  0x29   : > { %714 = dma.hbm_to_vmem [thread:$0]  (!%p960_p12), %s1077_s1, 256, %s217_s15, [#allocation3], %s857_s8, %s857_s8, %s858_s9  }
  0x2a   : > { %p1091_p13 = scmp.ne.s32.totalorder %s1089_s13, 0 }
  0x2b   : > { %p1092_p1 = scmp.eq.s32.totalorder (!%p1091_p13), %s924_s28, 0 }
  0x2c   : > { %254 = sbr.rel (%p1091_p13) target bundleno = 719 (0x2cf), region = 48 }
  0x33   : > { %833 = dma.done.wait (%p1092_p1), [#allocation3], 256   ;;  %p1093_p0 = pmov %p1092_p1 }
  0x34   : > { %p285_p5 = scmp.lt.s32.totalorder %s924_s28, 1  ;;  %v859_v0 = vmov 0.0|0.0   ;;  %vm860_vm0 = vmmov 0   ;;  %v861_v1 = vmov 0.0   ;;  %v290_v2 = vld [vmem:[#allocation2] sm:$0xff]  ;;  %v291_v3 = vld [vmem:[#allocation2 + $0x8] sm:$0xff] }
  0x35   : > { %835 = vsyncadd (%p1093_p0), [#allocation3], 4294967040  ;;  %690 = vmatprep.subr.bf16.mxu0 %v859_v0  ;;  %665 = vmatprep.mubr.msk.f32.mxu0 %vm860_vm0, %v861_v1  ;;  %v691_v4 = vpack.c.bf16 %v291_v3, %v290_v2  ;;  %v374_v5 = vld [vmem:[%s1079_s3] sm:$0xff]  ;;  %v375_v6 = vld [vmem:[%s1079_s3 + $0x8] sm:$0xff]  ;;  %vm299_vm1 = vcmask 130048   ;;  %vm385_vm2 = vcmask 261120  }
  0x36   : > { %s286_s16 = scalar_select %p285_p5, %s924_s28, 1  ;;  %693 = vmatprep.subr.bf16.mxu1 %v859_v0  ;;  %676 = vmatprep.mubr.msk.f32.mxu1 %vm860_vm0, %v861_v1  ;;  %v694_v7 = vpack.c.bf16 %v375_v6, %v374_v5  ;;  %v376_v9 = vld [vmem:[%s1079_s3 + $0x10] sm:$0xff]  ;;  %v377_v10 = vld [vmem:[%s1079_s3 + $0x18] sm:$0xff]  ;;  %v460_v12 = vld [vmem:[%s1081_s5] sm:$0xff] }
  0x37   : > { %692 = vmatpush3.bf16.msra.mxu0 %v691_v4  ;;  %v697_v11 = vpack.c.bf16 %v377_v10, %v376_v9  ;;  %v461_v13 = vld [vmem:[%s1081_s5 + $0x8] sm:$0xff]  ;;  %v638_v15 = vld [vmem:[%s1078_s2] ss:$0 sm:$0xff]  ;;  %v462_v20 = vld [vmem:[%s1081_s5 + $0x10] sm:$0xff]  ;;  %s282_s9 = sand.u32 1, %s846_s25   ;;  %p1094_p9 = scmp.ne.s32.totalorder %s1087_s11, 0 }
  0x38   : > { %s637_s13 = sshll.u32 %s286_s16, 3  ;;  %695 = vmatpush3.bf16.msra.mxu1 %v694_v7  ;;  %699 = vmatprep.subr.bf16.mxu0 %v859_v0  ;;  %v700_v14 = vpack.c.bf16 %v461_v13, %v460_v12  ;;  %v463_v21 = vld [vmem:[%s1081_s5 + $0x18] sm:$0xff]  ;;  %v640_v23 = vld [vmem:[%s1080_s4] ss:$0 sm:$0xff]  ;;  %s636_s14 = sshll.u32 %s282_s9, 3 }
  0x39   : > { %s288_s19 = scalar_lea.vmem %s1076_s0, %s637_s13  ;;  %696 = vmatprep.subr.bf16.mxu1 %v859_v0  ;;  %v703_v22 = vpack.c.bf16 %v463_v21, %v462_v20  ;;  %v642_v28 = vld [vmem:[%s1082_s6] ss:$0 sm:$0xff]  ;;  %s645_s13 = sshll.u32 %s924_s28, 7 }
  0x3a   : > { %v289_v8 = vld [vmem:[%s288_s19] sm:$0xff]  ;;  %s284_s15 = scalar_lea.vmem [#allocation5], %s636_s14  ;;  %s1033_s21 = scalar_lea.hbm %s1083_s7, %s645_s13 }
  0x3b   : > { %666 = vmatmul.mubr.msk.f32.vlgmr.msra.gmra.mrb[0].mxu0 %vm299_vm1, %v289_v8  ;;  %s559_s18 = sshll.u32 %s284_s15, 4  ;;  %s546_s22 = scalar_lea.sflag [#allocation4], %s282_s9  ;;  %s1035_s18 = int_to_ptr.vmem [resolvable:$true] %s559_s18 }
  0x3c   : > { %687 = vmatprep.mubr.msk.f32.mxu0 %vm860_vm0, %v861_v1  ;;  %698 = vmatpush3.bf16.msra.mxu1 %v697_v11  ;;  %s788_s23 = scalar_lea.vmem %s1035_s18, 128  ;;  %s862_s28 = smov [#allocation5]  }
  0x3d   : > { %701 = vmatpush3.bf16.msra.mxu0 %v700_v14  ;;  %p789_p6 = scmp.ne.s32.totalorder %s1035_s18, %s788_s23  ;;  %s792_s29 = sshll.u32 %s862_s28, 4  ;;  %s793_s29 = int_to_ptr.vmem [resolvable:$false] %s792_s29 }
  0x3e   : > { %702 = vmatprep.subr.bf16.mxu0 %v859_v0  ;;  %s794_s8 = scalar_lea.vmem %s793_s29, 256  ;;  %p795_p2 = scmp.lt.s32.totalorder %s1035_s18, %s793_s29 }
  0x3f   : > { %p790_p10 = pnand %p789_p6, %p1094_p9  ;;  %p796_p3 = scmp.lt.s32.totalorder %s794_s8, %s788_s23 }
  0x41   : > { %704 = vmatpush3.bf16.msra.mxu0 %v703_v22  ;;  %p791_p12 = pneg %p790_p10  ;;  %p797_p4 = por %p796_p3, %p795_p2 }
  0x43   : > { %p798_p7 = pnand %p797_p4, %p791_p12 }
 0x10e   : > { %v369_v16 = vpop.f32.mrb[0].mxu0 }
 0x10f   : > { %v370_v17 = vadd.f32 %v638_v15, %v369_v16  ;;  %v667_v18 = vpop.f32.mrb[1].mxu0 }
 0x111   : > { %v373_v19 = vmax.f32 %v370_v17, 0.0 }
 0x113   : > { %677 = vmatmul.mubr.msk.f32.vlgmr.msra.gmra.mrb[0].mxu1 %vm385_vm2, %v373_v19 }
 0x1e6   : > { %v455_v24 = vpop.f32.mrb[0].mxu1 }
 0x1e7   : > { %v456_v25 = vadd.f32 %v640_v23, %v455_v24  ;;  %v678_v26 = vpop.f32.mrb[1].mxu1 }
 0x1e9   : > { %v459_v27 = vmax.f32 %v456_v25, 0.0 }
 0x1eb   : > { %688 = vmatmul.mubr.msk.f32.vlgmr.msra.gmra.mrb[2].mxu0 %vm385_vm2, %v459_v27 }
 0x2be   : > { %v540_v29 = vpop.f32.mrb[2].mxu0 }
 0x2bf   : > { %v541_v30 = vadd.f32 %v642_v28, %v540_v29  ;;  %v689_v31 = vpop.f32.mrb[3].mxu0 }
 0x2c1   : > { %544 = vst.msk [vmem:[%s284_s15] sm:$0xff] %vm299_vm1, %v541_v30 }
 0x2c2   : > { %801 = shalt.err (!%p798_p7)
}
 0x2c3   : > { %s802_s9 = scalar_lea.hbm %s1033_s21, 128  ;;  %s806_s16 = scalar_lea.hbm %s1083_s7, 256 }
 0x2c4   : > { %p803_p8 = scmp.ne.s32.totalorder %s1033_s21, %s802_s9  ;;  %p807_p1 = scmp.lt.u32.totalorder %s1033_s21, %s1083_s7 }
 0x2c5   : > { %p808_p0 = scmp.lt.u32.totalorder %s806_s16, %s802_s9  ;;  %p810_p6 = scmp.lt.u32.totalorder %s802_s9, %s1033_s21 }
 0x2c6   : > { %p804_p11 = pnand %p803_p8, %p1094_p9 }
 0x2c7   : > { %p809_p5 = por %p808_p0, %p807_p1 }
 0x2c8   : > { %p805_p13 = pneg %p804_p11 }
 0x2c9   : > { %p811_p10 = por %p810_p6, %p809_p5 }
 0x2cb   : > { %p812_p12 = pnand %p811_p10, %p805_p13 }
 0x2cd   : > { %815 = shalt.err (!%p812_p12)
}
 0x2ce   : > { %709 = dma.vmem_to_hbm [thread:$0]  (%p1094_p9), %s1035_s18, 128, %s1033_s21, %s546_s22  }
 0x2cf PF: > { %p721_p2 = scmp.ge.s32.totalorder %s854_s27, 2  ;;  %s571_s19 = sand.u32 1, %s842_s24  }
 0x2d0   : > { %p1095_p3 = scmp.ne.s32.totalorder %s1088_s12, 0  ;;  %s572_s20 = scalar_lea.sflag [#allocation4], %s571_s19 }
 0x2d2   : > { %p716_p4 = pnand %p721_p2, %p1095_p3 }
 0x2d4   : > { %837 = dma.done.wait (!%p716_p4), %s572_s20, 128  }
 0x2d5   : > { %839 = vsyncadd (!%p716_p4), %s572_s20, 4294967168  ;;  %p18_p7 = scmp.ge.s32.totalorder %s928_s30, 4   ;;  %s1096_s24 = smov %s846_s25 }
 0x2d6   : > { %s1097_s25 = smov %s850_s26  ;;  %s1098_s26 = smov %s939_s10 }
 0x2d7   : > { %s1099_s27 = smov %s928_s30  ;;  %20 = sbr.rel (!%p18_p7) target bundleno = 4 (0x4), region = 88 }
 0x2de   :  { %577 = vsyncpa [#allocation3], 1 }
 0x2df   :  { %579 = vsyncpa [#allocation3 + $0x1], 1 }
 0x2e0   :  { %580 = vsyncpa [#allocation4], 1 }
 0x2e1   :  { %582 = vsyncpa [#allocation4 + $0x1], 1 }

// kernel: tpu_custom_call.1
= control target key start
LH: loop header
LB: loop body
LE: loop exit
PB: predicated region body
PF: predicated region fallthrough
CT: control target
= control target key end

     0   :  { %12 = vsyncpa [#allocation3], 0  ;;  %s1076_s0 = inlined_call_operand.vmem [shape: f32[16,16], index: 0, kind: input, shape index: {}]   ;;  %s1077_s1 = inlined_call_operand.hbm [shape: f32[16,32], index: 1, kind: input, shape index: {}]   ;;  %s1078_s2 = inlined_call_operand.vmem [shape: f32[1,32], index: 2, kind: input, shape index: {}]   ;;  %s1079_s3 = inlined_call_operand.vmem [shape: f32[32,32], index: 3, kind: input, shape index: {}]   ;;  %s1080_s4 = inlined_call_operand.vmem [shape: f32[1,32], index: 4, kind: input, shape index: {}]   ;;  %s1081_s5 = inlined_call_operand.vmem [shape: f32[32,16], index: 5, kind: input, shape index: {}]   ;;  %s1082_s6 = inlined_call_operand.vmem [shape: f32[1,16], index: 6, kind: input, shape index: {}]   ;;  %s1083_s7 = inlined_call_operand.hbm [shape: f32[16,16], index: 7, kind: output, shape index: {}]  }
   0x1   :  { %13 = vsyncpa [#allocation4], 0 }
   0x2   :  { %15 = vsyncpa [#allocation4 + $0x1], 0  ;;  %s903_s24 = smov 0   ;;  %s905_s25 = smov 0  }
   0x3   :  { %s907_s26 = smov 0   ;;  %s909_s27 = smov 0  }
   0x4 LB: > { %s924_s28 = sadd.s32 4294967295, %s854_s27   ;;  %s630_s29 = sadd.s32 4294967294, %s854_s27   ;;  %s854_s27 = sphi %s909_s27, %s1099_s27   ;;  %s850_s26 = sphi %s907_s26, %s1098_s26   ;;  %s846_s25 = sphi %s905_s25, %s1097_s25   ;;  %s842_s24 = sphi %s903_s24, %s1096_s24  }
   0x5   : > { %s928_s30 = sadd.s32 1, %s854_s27   ;;  %s180_s8 = sadd.s32 1, %s850_s26 }
   0x6   : > { %s177_s9 = ssub.s32 %s854_s27, %s928_s30  ;;  %p190_p0 = scmp.ne.s32.totalorder %s850_s26, %s846_s25 }
   0x7   : > { %p178_p1 = scmp.eq.s32.totalorder %s177_s9, 0  ;;  %p191_p2 = scmp.eq.s32.totalorder %s924_s28, 1 }
   0x8   : > { %p196_p3 = scmp.ne.s32.totalorder %s846_s25, %s842_s24  ;;  %p197_p4 = scmp.eq.s32.totalorder %s630_s29, 1 }
   0x9   : > { %s939_s10 = scalar_select %p178_p1, %s850_s26, %s180_s8  }
   0xa   : > { %p941_p5 = por %p191_p2, %p190_p0  ;;  %p945_p6 = por %p197_p4, %p196_p3 }
   0xb   : > { %p631_p7 = scmp.ge.s32.totalorder %s854_s27, 1  ;;  %p204_p8 = scmp.lt.s32.totalorder %s854_s27, 3 }
   0xc   : > { %s1087_s11 = scalar_select %p941_p5, 1, 0 }
   0xd   : > { %s1088_s12 = scalar_select %p945_p6, 1, 0 }
   0xe   : > { %p1084_p9 = scmp.eq.s32.totalorder %s924_s28, 0  ;;  %p952_p10 = pnand %p631_p7, %p204_p8 }
   0xf   : > { %s856_s14 = smov [#allocation2]   ;;  %s760_s19 = scalar_lea.hbm %s1077_s1, 256 }
  0x10   : > { %s1089_s13 = scalar_select %p952_p10, 1, 0 }
  0x11   : > { %s216_s15 = sshll.u32 %s856_s14, 4  ;;  %p711_p11 = pneg %p952_p10  ;;  %s217_s15 = int_to_ptr.vmem [resolvable:$true] %s216_s15 }
  0x12   : > { %p761_p13 = scmp.ne.s32.totalorder %s1077_s1, %s760_s19  ;;  %p767_p3 = scmp.lt.u32.totalorder %s760_s19, %s1077_s1 }
  0x13   : > { %p960_p12 = pnand %p1084_p9, %p711_p11 }
  0x15   : > { %p762_p0 = pneg %p960_p12 }
  0x17   : > { %p763_p1 = pnand %p762_p0, %p761_p13 }
  0x19   : > { %p764_p2 = pneg %p763_p1 }
  0x1b   : > { %p769_p4 = pnand %p767_p3, %p764_p2 }
  0x1d   : > { %772 = shalt.err (!%p769_p4)
}
  0x1e   : > { %s773_s29 = scalar_lea.vmem %s217_s15, 256  ;;  %p781_p9 = scmp.lt.s32.totalorder %s217_s15, %s217_s15 }
  0x1f   : > { %p774_p7 = scmp.ne.s32.totalorder %s217_s15, %s773_s29  ;;  %p782_p6 = scmp.lt.s32.totalorder %s773_s29, %s773_s29 }
  0x21   : > { %p776_p8 = pnand %p774_p7, %p762_p0  ;;  %p783_p5 = por %p782_p6, %p781_p9 }
  0x23   : > { %p777_p11 = pneg %p776_p8 }
  0x25   : > { %p784_p10 = pnand %p783_p5, %p777_p11 }
  0x27   : > { %787 = shalt.err (!%p784_p10)
}
  0x28   : > { %s857_s8 = smov 128   ;;  %s858_s9 = smov 8  }
  0x29   : > { %714 = dma.hbm_to_vmem [thread:$0]  (!%p960_p12), %s1077_s1, 256, %s217_s15, [#allocation3], %s857_s8, %s857_s8, %s858_s9  }
  0x2a   : > { %p1091_p13 = scmp.ne.s32.totalorder %s1089_s13, 0 }
  0x2b   : > { %p1092_p1 = scmp.eq.s32.totalorder (!%p1091_p13), %s924_s28, 0 }
  0x2c   : > { %254 = sbr.rel (%p1091_p13) target bundleno = 719 (0x2cf), region = 48 }
  0x33   : > { %833 = dma.done.wait (%p1092_p1), [#allocation3], 256   ;;  %p1093_p0 = pmov %p1092_p1 }
  0x34   : > { %p285_p5 = scmp.lt.s32.totalorder %s924_s28, 1  ;;  %v859_v0 = vmov 0.0|0.0   ;;  %vm860_vm0 = vmmov 0   ;;  %v861_v1 = vmov 0.0   ;;  %v290_v2 = vld [vmem:[#allocation2] sm:$0xff]  ;;  %v291_v3 = vld [vmem:[#allocation2 + $0x8] sm:$0xff] }
  0x35   : > { %835 = vsyncadd (%p1093_p0), [#allocation3], 4294967040  ;;  %690 = vmatprep.subr.bf16.mxu0 %v859_v0  ;;  %665 = vmatprep.mubr.msk.f32.mxu0 %vm860_vm0, %v861_v1  ;;  %v691_v4 = vpack.c.bf16 %v291_v3, %v290_v2  ;;  %v374_v5 = vld [vmem:[%s1079_s3] sm:$0xff]  ;;  %v375_v6 = vld [vmem:[%s1079_s3 + $0x8] sm:$0xff]  ;;  %vm299_vm1 = vcmask 130048   ;;  %vm385_vm2 = vcmask 261120  }
  0x36   : > { %s286_s16 = scalar_select %p285_p5, %s924_s28, 1  ;;  %693 = vmatprep.subr.bf16.mxu1 %v859_v0  ;;  %676 = vmatprep.mubr.msk.f32.mxu1 %vm860_vm0, %v861_v1  ;;  %v694_v7 = vpack.c.bf16 %v375_v6, %v374_v5  ;;  %v376_v9 = vld [vmem:[%s1079_s3 + $0x10] sm:$0xff]  ;;  %v377_v10 = vld [vmem:[%s1079_s3 + $0x18] sm:$0xff]  ;;  %v460_v12 = vld [vmem:[%s1081_s5] sm:$0xff] }
  0x37   : > { %692 = vmatpush3.bf16.msra.mxu0 %v691_v4  ;;  %v697_v11 = vpack.c.bf16 %v377_v10, %v376_v9  ;;  %v461_v13 = vld [vmem:[%s1081_s5 + $0x8] sm:$0xff]  ;;  %v638_v15 = vld [vmem:[%s1078_s2] ss:$0 sm:$0xff]  ;;  %v462_v20 = vld [vmem:[%s1081_s5 + $0x10] sm:$0xff]  ;;  %s282_s9 = sand.u32 1, %s846_s25   ;;  %p1094_p9 = scmp.ne.s32.totalorder %s1087_s11, 0 }
  0x38   : > { %s637_s13 = sshll.u32 %s286_s16, 3  ;;  %695 = vmatpush3.bf16.msra.mxu1 %v694_v7  ;;  %699 = vmatprep.subr.bf16.mxu0 %v859_v0  ;;  %v700_v14 = vpack.c.bf16 %v461_v13, %v460_v12  ;;  %v463_v21 = vld [vmem:[%s1081_s5 + $0x18] sm:$0xff]  ;;  %v640_v23 = vld [vmem:[%s1080_s4] ss:$0 sm:$0xff]  ;;  %s636_s14 = sshll.u32 %s282_s9, 3 }
  0x39   : > { %s288_s19 = scalar_lea.vmem %s1076_s0, %s637_s13  ;;  %696 = vmatprep.subr.bf16.mxu1 %v859_v0  ;;  %v703_v22 = vpack.c.bf16 %v463_v21, %v462_v20  ;;  %v642_v28 = vld [vmem:[%s1082_s6] ss:$0 sm:$0xff]  ;;  %s645_s13 = sshll.u32 %s924_s28, 7 }
  0x3a   : > { %v289_v8 = vld [vmem:[%s288_s19] sm:$0xff]  ;;  %s284_s15 = scalar_lea.vmem [#allocation5], %s636_s14  ;;  %s1033_s21 = scalar_lea.hbm %s1083_s7, %s645_s13 }
  0x3b   : > { %666 = vmatmul.mubr.msk.f32.vlgmr.msra.gmra.mrb[0].mxu0 %vm299_vm1, %v289_v8  ;;  %s559_s18 = sshll.u32 %s284_s15, 4  ;;  %s546_s22 = scalar_lea.sflag [#allocation4], %s282_s9  ;;  %s1035_s18 = int_to_ptr.vmem [resolvable:$true] %s559_s18 }
  0x3c   : > { %687 = vmatprep.mubr.msk.f32.mxu0 %vm860_vm0, %v861_v1  ;;  %698 = vmatpush3.bf16.msra.mxu1 %v697_v11  ;;  %s788_s23 = scalar_lea.vmem %s1035_s18, 128  ;;  %s862_s28 = smov [#allocation5]  }
  0x3d   : > { %701 = vmatpush3.bf16.msra.mxu0 %v700_v14  ;;  %p789_p6 = scmp.ne.s32.totalorder %s1035_s18, %s788_s23  ;;  %s792_s29 = sshll.u32 %s862_s28, 4  ;;  %s793_s29 = int_to_ptr.vmem [resolvable:$false] %s792_s29 }
  0x3e   : > { %702 = vmatprep.subr.bf16.mxu0 %v859_v0  ;;  %s794_s8 = scalar_lea.vmem %s793_s29, 256  ;;  %p795_p2 = scmp.lt.s32.totalorder %s1035_s18, %s793_s29 }
  0x3f   : > { %p790_p10 = pnand %p789_p6, %p1094_p9  ;;  %p796_p3 = scmp.lt.s32.totalorder %s794_s8, %s788_s23 }
  0x41   : > { %704 = vmatpush3.bf16.msra.mxu0 %v703_v22  ;;  %p791_p12 = pneg %p790_p10  ;;  %p797_p4 = por %p796_p3, %p795_p2 }
  0x43   : > { %p798_p7 = pnand %p797_p4, %p791_p12 }
 0x10e   : > { %v369_v16 = vpop.f32.mrb[0].mxu0 }
 0x10f   : > { %v370_v17 = vadd.f32 %v638_v15, %v369_v16  ;;  %v667_v18 = vpop.f32.mrb[1].mxu0 }
 0x111   : > { %v373_v19 = vmax.f32 %v370_v17, 0.0 }
 0x113   : > { %677 = vmatmul.mubr.msk.f32.vlgmr.msra.gmra.mrb[0].mxu1 %vm385_vm2, %v373_v19 }
 0x1e6   : > { %v455_v24 = vpop.f32.mrb[0].mxu1 }
 0x1e7   : > { %v456_v25 = vadd.f32 %v640_v23, %v455_v24  ;;  %v678_v26 = vpop.f32.mrb[1].mxu1 }
 0x1e9   : > { %v459_v27 = vmax.f32 %v456_v25, 0.0 }
 0x1eb   : > { %688 = vmatmul.mubr.msk.f32.vlgmr.msra.gmra.mrb[2].mxu0 %vm385_vm2, %v459_v27 }
 0x2be   : > { %v540_v29 = vpop.f32.mrb[2].mxu0 }
 0x2bf   : > { %v541_v30 = vadd.f32 %v642_v28, %v540_v29  ;;  %v689_v31 = vpop.f32.mrb[3].mxu0 }
 0x2c1   : > { %544 = vst.msk [vmem:[%s284_s15] sm:$0xff] %vm299_vm1, %v541_v30 }
 0x2c2   : > { %801 = shalt.err (!%p798_p7)
}
 0x2c3   : > { %s802_s9 = scalar_lea.hbm %s1033_s21, 128  ;;  %s806_s16 = scalar_lea.hbm %s1083_s7, 256 }
 0x2c4   : > { %p803_p8 = scmp.ne.s32.totalorder %s1033_s21, %s802_s9  ;;  %p807_p1 = scmp.lt.u32.totalorder %s1033_s21, %s1083_s7 }
 0x2c5   : > { %p808_p0 = scmp.lt.u32.totalorder %s806_s16, %s802_s9  ;;  %p810_p6 = scmp.lt.u32.totalorder %s802_s9, %s1033_s21 }
 0x2c6   : > { %p804_p11 = pnand %p803_p8, %p1094_p9 }
 0x2c7   : > { %p809_p5 = por %p808_p0, %p807_p1 }
 0x2c8   : > { %p805_p13 = pneg %p804_p11 }
 0x2c9   : > { %p811_p10 = por %p810_p6, %p809_p5 }
 0x2cb   : > { %p812_p12 = pnand %p811_p10, %p805_p13 }
 0x2cd   : > { %815 = shalt.err (!%p812_p12)
}
 0x2ce   : > { %709 = dma.vmem_to_hbm [thread:$0]  (%p1094_p9), %s1035_s18, 128, %s1033_s21, %s546_s22  }
 0x2cf PF: > { %p721_p2 = scmp.ge.s32.totalorder %s854_s27, 2  ;;  %s571_s19 = sand.u32 1, %s842_s24  }
 0x2d0   : > { %p1095_p3 = scmp.ne.s32.totalorder %s1088_s12, 0  ;;  %s572_s20 = scalar_lea.sflag [#allocation4], %s571_s19 }
 0x2d2   : > { %p716_p4 = pnand %p721_p2, %p1095_p3 }
 0x2d4   : > { %837 = dma.done.wait (!%p716_p4), %s572_s20, 128  }
 0x2d5   : > { %839 = vsyncadd (!%p716_p4), %s572_s20, 4294967168  ;;  %p18_p7 = scmp.ge.s32.totalorder %s928_s30, 4   ;;  %s1096_s24 = smov %s846_s25 }
 0x2d6   : > { %s1097_s25 = smov %s850_s26  ;;  %s1098_s26 = smov %s939_s10 }
 0x2d7   : > { %s1099_s27 = smov %s928_s30  ;;  %20 = sbr.rel (!%p18_p7) target bundleno = 4 (0x4), region = 88 }
 0x2de   :  { %577 = vsyncpa [#allocation3], 1 }
 0x2df   :  { %579 = vsyncpa [#allocation3 + $0x1], 1 }
 0x2e0   :  { %580 = vsyncpa [#allocation4], 1 }
 0x2e1   :  { %582 = vsyncpa [#allocation4 + $0x1], 1 }

</bundles_post_ra>
